<compile_context>
chip_gen: v7x
topology: tpu7x:2x2x1
jax: 0.10.0
libtpu: 0.0.40
codegen_flags: <defaults>
</compile_context>

<pallas_src>
import functools

import jax
import jax.numpy as jnp
import numpy as np
from jax import lax
from jax.experimental import pallas as pl
from jax.experimental.pallas import tpu as pltpu

EPS = 1e-5
KSIZE = 3


def _pixel_indices(shape, height, width):
    """h/w indices for the flattened (n*H*W) lane axis, broadcast to `shape`."""
    p = lax.broadcasted_iota(jnp.int32, shape, 1)
    if (width & (width - 1)) == 0 and (height & (height - 1)) == 0:
        # power-of-two fast path: pure shifts/ands on the VPU
        w_idx = p & (width - 1)
        h_idx = (p >> (width.bit_length() - 1)) & (height - 1)
    else:
        w_idx = p % width
        h_idx = (p // width) % height
    return h_idx, w_idx


def _conv3x3(x_cm, w_mat, height, width):
    """3x3 'same' conv in (C, N*H*W) layout as a single im2col matmul.

    x_cm:  (Cin, N*H*W) activations (pixels flattened n-major, then h, then w).
    w_mat: (Cout, 9*Cin), columns ordered (tap, ci) with tap = dy*3 + dx.
    Returns (Cout, N*H*W) float32.
    """
    cin, total = x_cm.shape
    h_idx, w_idx = _pixel_indices((cin, total), height, width)

    pieces = []
    for dy in range(KSIZE):
        for dx in range(KSIZE):
            s = (dy - 1) * width + (dx - 1)  # source offset along flat pixels
            v = x_cm if s == 0 else pltpu.roll(x_cm, shift=(-s) % total, axis=1)
            mask = None
            if dy == 0:
                mask = h_idx >= 1
            elif dy == 2:
                mask = h_idx <= height - 2
            if dx == 0:
                m = w_idx >= 1
                mask = m if mask is None else jnp.logical_and(mask, m)
            elif dx == 2:
                m = w_idx <= width - 2
                mask = m if mask is None else jnp.logical_and(mask, m)
            if mask is not None:
                v = jnp.where(mask, v, 0.0)  # zero padding at the borders
            pieces.append(v)

    patches = jnp.concatenate(pieces, axis=0)           # (9*Cin, N*H*W)
    return jnp.dot(w_mat, patches, preferred_element_type=jnp.float32)


def _bn_relu(acc, gamma, beta, count):
    """Training-mode BatchNorm + ReLU over (Cout, N*H*W); per-row statistics."""
    inv_n = 1.0 / count
    total = jnp.sum(acc, axis=1, keepdims=True)            # (Cout, 1)
    total_sq = jnp.sum(acc * acc, axis=1, keepdims=True)   # single-pass stats
    mean = total * inv_n
    var = total_sq * inv_n - mean * mean                   # biased variance
    scale = lax.rsqrt(var + EPS) * gamma
    return jnp.maximum((acc - mean) * scale + beta, 0.0)


def unet_conv_block_kernel(x_ref, w1_ref, g1_ref, bt1_ref,
                           w2_ref, g2_ref, bt2_ref, o_ref,
                           *, height, width):
    total = x_ref.shape[-1]
    x = x_ref[...]                                         # (Cin, N*H*W)

    # conv1 -> BN1 -> ReLU
    acc1 = _conv3x3(x, w1_ref[...], height, width)         # (Cout, N*H*W) f32
    y1 = _bn_relu(acc1, g1_ref[...], bt1_ref[...], total)

    # conv2 -> BN2 -> ReLU (halo handled by roll+mask, no padded scratch)
    acc2 = _conv3x3(y1, w2_ref[...], height, width)
    y2 = _bn_relu(acc2, g2_ref[...], bt2_ref[...], total)

    o_ref[...] = y2.astype(o_ref.dtype)                    # lane-dense store


def unet_conv_block(x_nchw, params):
    """x_nchw: (N, Cin, H, W) float32. Returns (N, Cout, H, W) float32."""
    w1, b1, g1, bt1, w2, b2, g2, bt2 = params
    # Conv bias before training-mode BatchNorm cancels in (x - mean): drop it.
    del b1, b2
    n, cin, height, width = x_nchw.shape
    cout = w1.shape[-1]
    total = n * height * width

    # (N, Cin, H, W) -> (Cin, N*H*W): channels on sublanes, pixels on lanes.
    x_cm = jnp.transpose(x_nchw, (1, 0, 2, 3)).reshape(cin, total)
    # HWIO -> (Cout, 9*Cin): column order (tap, ci) matches the in-kernel stack.
    w1_mat = jnp.transpose(w1.reshape(KSIZE * KSIZE * cin, cout))
    w2_mat = jnp.transpose(w2.reshape(KSIZE * KSIZE * cout, cout))

    vmem = pl.BlockSpec(memory_space=pltpu.MemorySpace.VMEM)
    kernel = functools.partial(unet_conv_block_kernel,
                               height=height, width=width)

    out_cm = pl.pallas_call(
        kernel,
        out_shape=jax.ShapeDtypeStruct((cout, total), jnp.float32),
        in_specs=[vmem] * 7,
        out_specs=vmem,
    )(x_cm, w1_mat,
      g1.reshape(cout, 1), bt1.reshape(cout, 1),
      w2_mat,
      g2.reshape(cout, 1), bt2.reshape(cout, 1))

    # (Cout, N*H*W) -> (N, Cout, H, W)
    return jnp.transpose(out_cm.reshape(cout, n, height, width), (1, 0, 2, 3))


# ------------------------- pure-JAX reference -------------------------------
def _ref_conv_bn_relu(x_nchw, w_hwio, bias, gamma, beta):
    w_oihw = jnp.transpose(w_hwio, (3, 2, 0, 1))
    dn = lax.conv_dimension_numbers(x_nchw.shape, w_oihw.shape,
                                    ("NCHW", "OIHW", "NCHW"))
    y = lax.conv_general_dilated(x_nchw, w_oihw, (1, 1), ((1, 1), (1, 1)),
                                 dimension_numbers=dn)
    y = y + bias.reshape(1, -1, 1, 1)
    mean = jnp.mean(y, axis=(0, 2, 3), keepdims=True)
    var = jnp.mean((y - mean) ** 2, axis=(0, 2, 3), keepdims=True)
    y = (y - mean) * lax.rsqrt(var + EPS)
    y = y * gamma.reshape(1, -1, 1, 1) + beta.reshape(1, -1, 1, 1)
    return jnp.maximum(y, 0.0)


def ref_forward(x_nchw, params):
    w1, b1, g1, bt1, w2, b2, g2, bt2 = params
    y = _ref_conv_bn_relu(x_nchw, w1, b1, g1, bt1)
    y = _ref_conv_bn_relu(y, w2, b2, g2, bt2)
    return y


# ------------------------------- main ----------------------------------------
if __name__ == "__main__":
    N, Cin, Cout, H, W = 2, 4, 8, 16, 16

    key = jax.random.PRNGKey(0)
    keys = jax.random.split(key, 9)
    x = jax.random.normal(keys[0], (N, Cin, H, W), jnp.float32)

    # Deterministic synthetic parameters (weights in HWIO layout).
    w1 = 0.1 * jax.random.normal(keys[1], (KSIZE, KSIZE, Cin, Cout), jnp.float32)
    b1 = 0.05 * jax.random.normal(keys[2], (Cout,), jnp.float32)
    g1 = 1.0 + 0.1 * jax.random.normal(keys[3], (Cout,), jnp.float32)
    bt1 = 0.1 * jax.random.normal(keys[4], (Cout,), jnp.float32)
    w2 = 0.1 * jax.random.normal(keys[5], (KSIZE, KSIZE, Cout, Cout), jnp.float32)
    b2 = 0.05 * jax.random.normal(keys[6], (Cout,), jnp.float32)
    g2 = 1.0 + 0.1 * jax.random.normal(keys[7], (Cout,), jnp.float32)
    bt2 = 0.1 * jax.random.normal(keys[8], (Cout,), jnp.float32)

    params = (w1, b1, g1, bt1, w2, b2, g2, bt2)

    out = jax.block_until_ready(jax.jit(unet_conv_block)(x, params))
    ref = jax.block_until_ready(ref_forward(x, params))

    assert out.shape == (N, Cout, H, W), out.shape
    np.testing.assert_allclose(np.asarray(out), np.asarray(ref),
                               rtol=2e-3, atol=2e-3)
    print("KERNEL_OK")
</pallas_src>

<mosaic_0001>
module attributes {stable_mosaic.version = 11 : i64} {
  func.func @unet_conv_block_kernel(%arg0: memref<4x512xf32, #tpu.memory_space<vmem>>, %arg1: memref<8x36xf32, #tpu.memory_space<vmem>>, %arg2: memref<8x1xf32, #tpu.memory_space<vmem>>, %arg3: memref<8x1xf32, #tpu.memory_space<vmem>>, %arg4: memref<8x72xf32, #tpu.memory_space<vmem>>, %arg5: memref<8x1xf32, #tpu.memory_space<vmem>>, %arg6: memref<8x1xf32, #tpu.memory_space<vmem>>, %arg7: memref<8x512xf32, #tpu.memory_space<vmem>>) attributes {dimension_semantics = [], scalar_prefetch = 0 : i64, scratch_operands = 0 : i64, tpu.core_type = #tpu.core_type<tc>} {
    %c0 = arith.constant 0 : index
    %c0_0 = arith.constant 0 : index
    %0 = vector.load %arg0[%c0, %c0_0] : memref<4x512xf32, #tpu.memory_space<vmem>>, vector<4x512xf32>
    %c0_1 = arith.constant 0 : index
    %c0_2 = arith.constant 0 : index
    %1 = vector.load %arg1[%c0_1, %c0_2] : memref<8x36xf32, #tpu.memory_space<vmem>>, vector<8x36xf32>
    %2 = tpu.iota {dimensions = array<i32: 1>} : vector<4x512xi32>
    %c15_i32 = arith.constant 15 : i32
    %3 = vector.broadcast %c15_i32 : i32 to vector<4x512xi32>
    %4 = arith.andi %2, %3 : vector<4x512xi32>
    %c4_i32 = arith.constant 4 : i32
    %5 = vector.broadcast %c4_i32 : i32 to vector<4x512xi32>
    %6 = arith.shrsi %2, %5 : vector<4x512xi32>
    %c15_i32_3 = arith.constant 15 : i32
    %7 = vector.broadcast %c15_i32_3 : i32 to vector<4x512xi32>
    %8 = arith.andi %6, %7 : vector<4x512xi32>
    %c17_i32 = arith.constant 17 : i32
    %9 = tpu.dynamic_rotate %0 by %c17_i32 dim 1 : vector<4x512xf32>, i32 -> vector<4x512xf32>
    %c1_i32 = arith.constant 1 : i32
    %10 = vector.broadcast %c1_i32 : i32 to vector<4x512xi32>
    %11 = arith.cmpi sge, %8, %10 : vector<4x512xi32>
    %c1_i32_4 = arith.constant 1 : i32
    %12 = vector.broadcast %c1_i32_4 : i32 to vector<4x512xi32>
    %13 = arith.cmpi sge, %4, %12 : vector<4x512xi32>
    %14 = arith.andi %11, %13 : vector<4x512xi1>
    %cst = arith.constant 0.000000e+00 : f32
    %15 = vector.broadcast %cst : f32 to vector<4x512xf32>
    %16 = arith.select %14, %9, %15 : vector<4x512xi1>, vector<4x512xf32>
    %c16_i32 = arith.constant 16 : i32
    %17 = tpu.dynamic_rotate %0 by %c16_i32 dim 1 : vector<4x512xf32>, i32 -> vector<4x512xf32>
    %c1_i32_5 = arith.constant 1 : i32
    %18 = vector.broadcast %c1_i32_5 : i32 to vector<4x512xi32>
    %19 = arith.cmpi sge, %8, %18 : vector<4x512xi32>
    %cst_6 = arith.constant 0.000000e+00 : f32
    %20 = vector.broadcast %cst_6 : f32 to vector<4x512xf32>
    %21 = arith.select %19, %17, %20 : vector<4x512xi1>, vector<4x512xf32>
    %c15_i32_7 = arith.constant 15 : i32
    %22 = tpu.dynamic_rotate %0 by %c15_i32_7 dim 1 : vector<4x512xf32>, i32 -> vector<4x512xf32>
    %c1_i32_8 = arith.constant 1 : i32
    %23 = vector.broadcast %c1_i32_8 : i32 to vector<4x512xi32>
    %24 = arith.cmpi sge, %8, %23 : vector<4x512xi32>
    %c14_i32 = arith.constant 14 : i32
    %25 = vector.broadcast %c14_i32 : i32 to vector<4x512xi32>
    %26 = arith.cmpi sle, %4, %25 : vector<4x512xi32>
    %27 = arith.andi %24, %26 : vector<4x512xi1>
    %cst_9 = arith.constant 0.000000e+00 : f32
    %28 = vector.broadcast %cst_9 : f32 to vector<4x512xf32>
    %29 = arith.select %27, %22, %28 : vector<4x512xi1>, vector<4x512xf32>
    %c1_i32_10 = arith.constant 1 : i32
    %30 = tpu.dynamic_rotate %0 by %c1_i32_10 dim 1 : vector<4x512xf32>, i32 -> vector<4x512xf32>
    %c1_i32_11 = arith.constant 1 : i32
    %31 = vector.broadcast %c1_i32_11 : i32 to vector<4x512xi32>
    %32 = arith.cmpi sge, %4, %31 : vector<4x512xi32>
    %cst_12 = arith.constant 0.000000e+00 : f32
    %33 = vector.broadcast %cst_12 : f32 to vector<4x512xf32>
    %34 = arith.select %32, %30, %33 : vector<4x512xi1>, vector<4x512xf32>
    %c511_i32 = arith.constant 511 : i32
    %35 = tpu.dynamic_rotate %0 by %c511_i32 dim 1 : vector<4x512xf32>, i32 -> vector<4x512xf32>
    %c14_i32_13 = arith.constant 14 : i32
    %36 = vector.broadcast %c14_i32_13 : i32 to vector<4x512xi32>
    %37 = arith.cmpi sle, %4, %36 : vector<4x512xi32>
    %cst_14 = arith.constant 0.000000e+00 : f32
    %38 = vector.broadcast %cst_14 : f32 to vector<4x512xf32>
    %39 = arith.select %37, %35, %38 : vector<4x512xi1>, vector<4x512xf32>
    %c497_i32 = arith.constant 497 : i32
    %40 = tpu.dynamic_rotate %0 by %c497_i32 dim 1 : vector<4x512xf32>, i32 -> vector<4x512xf32>
    %c14_i32_15 = arith.constant 14 : i32
    %41 = vector.broadcast %c14_i32_15 : i32 to vector<4x512xi32>
    %42 = arith.cmpi sle, %8, %41 : vector<4x512xi32>
    %c1_i32_16 = arith.constant 1 : i32
    %43 = vector.broadcast %c1_i32_16 : i32 to vector<4x512xi32>
    %44 = arith.cmpi sge, %4, %43 : vector<4x512xi32>
    %45 = arith.andi %42, %44 : vector<4x512xi1>
    %cst_17 = arith.constant 0.000000e+00 : f32
    %46 = vector.broadcast %cst_17 : f32 to vector<4x512xf32>
    %47 = arith.select %45, %40, %46 : vector<4x512xi1>, vector<4x512xf32>
    %c496_i32 = arith.constant 496 : i32
    %48 = tpu.dynamic_rotate %0 by %c496_i32 dim 1 : vector<4x512xf32>, i32 -> vector<4x512xf32>
    %c14_i32_18 = arith.constant 14 : i32
    %49 = vector.broadcast %c14_i32_18 : i32 to vector<4x512xi32>
    %50 = arith.cmpi sle, %8, %49 : vector<4x512xi32>
    %cst_19 = arith.constant 0.000000e+00 : f32
    %51 = vector.broadcast %cst_19 : f32 to vector<4x512xf32>
    %52 = arith.select %50, %48, %51 : vector<4x512xi1>, vector<4x512xf32>
    %c495_i32 = arith.constant 495 : i32
    %53 = tpu.dynamic_rotate %0 by %c495_i32 dim 1 : vector<4x512xf32>, i32 -> vector<4x512xf32>
    %c14_i32_20 = arith.constant 14 : i32
    %54 = vector.broadcast %c14_i32_20 : i32 to vector<4x512xi32>
    %55 = arith.cmpi sle, %8, %54 : vector<4x512xi32>
    %c14_i32_21 = arith.constant 14 : i32
    %56 = vector.broadcast %c14_i32_21 : i32 to vector<4x512xi32>
    %57 = arith.cmpi sle, %4, %56 : vector<4x512xi32>
    %58 = arith.andi %55, %57 : vector<4x512xi1>
    %cst_22 = arith.constant 0.000000e+00 : f32
    %59 = vector.broadcast %cst_22 : f32 to vector<4x512xf32>
    %60 = arith.select %58, %53, %59 : vector<4x512xi1>, vector<4x512xf32>
    %61 = tpu.concatenate %16, %21, %29, %34, %0, %39, %47, %52, %60 in 0 : vector<4x512xf32>, vector<4x512xf32>, vector<4x512xf32>, vector<4x512xf32>, vector<4x512xf32>, vector<4x512xf32>, vector<4x512xf32>, vector<4x512xf32>, vector<4x512xf32> -> vector<36x512xf32>
    %cst_23 = arith.constant dense<0.000000e+00> : vector<8x512xf32>
    %62 = tpu.matmul %1, %61, %cst_23 {dimension_numbers = #tpu.dot_dimension_numbers<[1], [0], [0], [1], [0, 0, 1, 1], [], []>} : vector<8x36xf32>, vector<36x512xf32>, vector<8x512xf32> -> vector<8x512xf32>
    %c0_24 = arith.constant 0 : index
    %c0_25 = arith.constant 0 : index
    %63 = vector.load %arg2[%c0_24, %c0_25] : memref<8x1xf32, #tpu.memory_space<vmem>>, vector<8x1xf32>
    %c0_26 = arith.constant 0 : index
    %c0_27 = arith.constant 0 : index
    %64 = vector.load %arg3[%c0_26, %c0_27] : memref<8x1xf32, #tpu.memory_space<vmem>>, vector<8x1xf32>
    %cst_28 = arith.constant dense<0.000000e+00> : vector<8xf32>
    %65 = vector.multi_reduction <add>, %62, %cst_28 [1] : vector<8x512xf32> to vector<8xf32>
    %66 = vector.shape_cast %65 : vector<8xf32> to vector<8x1xf32>
    %67 = arith.mulf %62, %62 : vector<8x512xf32>
    %cst_29 = arith.constant dense<0.000000e+00> : vector<8xf32>
    %68 = vector.multi_reduction <add>, %67, %cst_29 [1] : vector<8x512xf32> to vector<8xf32>
    %69 = vector.shape_cast %68 : vector<8xf32> to vector<8x1xf32>
    %cst_30 = arith.constant 0.001953125 : f32
    %70 = vector.broadcast %cst_30 : f32 to vector<8x1xf32>
    %71 = arith.mulf %66, %70 : vector<8x1xf32>
    %cst_31 = arith.constant 0.001953125 : f32
    %72 = vector.broadcast %cst_31 : f32 to vector<8x1xf32>
    %73 = arith.mulf %69, %72 : vector<8x1xf32>
    %74 = arith.mulf %71, %71 : vector<8x1xf32>
    %75 = arith.subf %73, %74 : vector<8x1xf32>
    %cst_32 = arith.constant 9.99999974E-6 : f32
    %76 = vector.broadcast %cst_32 : f32 to vector<8x1xf32>
    %77 = arith.addf %75, %76 : vector<8x1xf32>
    %78 = math.rsqrt %77 : vector<8x1xf32>
    %79 = arith.mulf %78, %63 : vector<8x1xf32>
    %80 = vector.broadcast %71 : vector<8x1xf32> to vector<8x512xf32>
    %81 = arith.subf %62, %80 : vector<8x512xf32>
    %82 = vector.broadcast %79 : vector<8x1xf32> to vector<8x512xf32>
    %83 = arith.mulf %81, %82 : vector<8x512xf32>
    %84 = vector.broadcast %64 : vector<8x1xf32> to vector<8x512xf32>
    %85 = arith.addf %83, %84 : vector<8x512xf32>
    %cst_33 = arith.constant 0.000000e+00 : f32
    %86 = vector.broadcast %cst_33 : f32 to vector<8x512xf32>
    %87 = arith.maximumf %85, %86 : vector<8x512xf32>
    %c0_34 = arith.constant 0 : index
    %c0_35 = arith.constant 0 : index
    %88 = vector.load %arg4[%c0_34, %c0_35] : memref<8x72xf32, #tpu.memory_space<vmem>>, vector<8x72xf32>
    %89 = tpu.iota {dimensions = array<i32: 1>} : vector<8x512xi32>
    %c15_i32_36 = arith.constant 15 : i32
    %90 = vector.broadcast %c15_i32_36 : i32 to vector<8x512xi32>
    %91 = arith.andi %89, %90 : vector<8x512xi32>
    %c4_i32_37 = arith.constant 4 : i32
    %92 = vector.broadcast %c4_i32_37 : i32 to vector<8x512xi32>
    %93 = arith.shrsi %89, %92 : vector<8x512xi32>
    %c15_i32_38 = arith.constant 15 : i32
    %94 = vector.broadcast %c15_i32_38 : i32 to vector<8x512xi32>
    %95 = arith.andi %93, %94 : vector<8x512xi32>
    %c17_i32_39 = arith.constant 17 : i32
    %96 = tpu.dynamic_rotate %87 by %c17_i32_39 dim 1 : vector<8x512xf32>, i32 -> vector<8x512xf32>
    %c1_i32_40 = arith.constant 1 : i32
    %97 = vector.broadcast %c1_i32_40 : i32 to vector<8x512xi32>
    %98 = arith.cmpi sge, %95, %97 : vector<8x512xi32>
    %c1_i32_41 = arith.constant 1 : i32
    %99 = vector.broadcast %c1_i32_41 : i32 to vector<8x512xi32>
    %100 = arith.cmpi sge, %91, %99 : vector<8x512xi32>
    %101 = arith.andi %98, %100 : vector<8x512xi1>
    %cst_42 = arith.constant 0.000000e+00 : f32
    %102 = vector.broadcast %cst_42 : f32 to vector<8x512xf32>
    %103 = arith.select %101, %96, %102 : vector<8x512xi1>, vector<8x512xf32>
    %c16_i32_43 = arith.constant 16 : i32
    %104 = tpu.dynamic_rotate %87 by %c16_i32_43 dim 1 : vector<8x512xf32>, i32 -> vector<8x512xf32>
    %c1_i32_44 = arith.constant 1 : i32
    %105 = vector.broadcast %c1_i32_44 : i32 to vector<8x512xi32>
    %106 = arith.cmpi sge, %95, %105 : vector<8x512xi32>
    %cst_45 = arith.constant 0.000000e+00 : f32
    %107 = vector.broadcast %cst_45 : f32 to vector<8x512xf32>
    %108 = arith.select %106, %104, %107 : vector<8x512xi1>, vector<8x512xf32>
    %c15_i32_46 = arith.constant 15 : i32
    %109 = tpu.dynamic_rotate %87 by %c15_i32_46 dim 1 : vector<8x512xf32>, i32 -> vector<8x512xf32>
    %c1_i32_47 = arith.constant 1 : i32
    %110 = vector.broadcast %c1_i32_47 : i32 to vector<8x512xi32>
    %111 = arith.cmpi sge, %95, %110 : vector<8x512xi32>
    %c14_i32_48 = arith.constant 14 : i32
    %112 = vector.broadcast %c14_i32_48 : i32 to vector<8x512xi32>
    %113 = arith.cmpi sle, %91, %112 : vector<8x512xi32>
    %114 = arith.andi %111, %113 : vector<8x512xi1>
    %cst_49 = arith.constant 0.000000e+00 : f32
    %115 = vector.broadcast %cst_49 : f32 to vector<8x512xf32>
    %116 = arith.select %114, %109, %115 : vector<8x512xi1>, vector<8x512xf32>
    %c1_i32_50 = arith.constant 1 : i32
    %117 = tpu.dynamic_rotate %87 by %c1_i32_50 dim 1 : vector<8x512xf32>, i32 -> vector<8x512xf32>
    %c1_i32_51 = arith.constant 1 : i32
    %118 = vector.broadcast %c1_i32_51 : i32 to vector<8x512xi32>
    %119 = arith.cmpi sge, %91, %118 : vector<8x512xi32>
    %cst_52 = arith.constant 0.000000e+00 : f32
    %120 = vector.broadcast %cst_52 : f32 to vector<8x512xf32>
    %121 = arith.select %119, %117, %120 : vector<8x512xi1>, vector<8x512xf32>
    %c511_i32_53 = arith.constant 511 : i32
    %122 = tpu.dynamic_rotate %87 by %c511_i32_53 dim 1 : vector<8x512xf32>, i32 -> vector<8x512xf32>
    %c14_i32_54 = arith.constant 14 : i32
    %123 = vector.broadcast %c14_i32_54 : i32 to vector<8x512xi32>
    %124 = arith.cmpi sle, %91, %123 : vector<8x512xi32>
    %cst_55 = arith.constant 0.000000e+00 : f32
    %125 = vector.broadcast %cst_55 : f32 to vector<8x512xf32>
    %126 = arith.select %124, %122, %125 : vector<8x512xi1>, vector<8x512xf32>
    %c497_i32_56 = arith.constant 497 : i32
    %127 = tpu.dynamic_rotate %87 by %c497_i32_56 dim 1 : vector<8x512xf32>, i32 -> vector<8x512xf32>
    %c14_i32_57 = arith.constant 14 : i32
    %128 = vector.broadcast %c14_i32_57 : i32 to vector<8x512xi32>
    %129 = arith.cmpi sle, %95, %128 : vector<8x512xi32>
    %c1_i32_58 = arith.constant 1 : i32
    %130 = vector.broadcast %c1_i32_58 : i32 to vector<8x512xi32>
    %131 = arith.cmpi sge, %91, %130 : vector<8x512xi32>
    %132 = arith.andi %129, %131 : vector<8x512xi1>
    %cst_59 = arith.constant 0.000000e+00 : f32
    %133 = vector.broadcast %cst_59 : f32 to vector<8x512xf32>
    %134 = arith.select %132, %127, %133 : vector<8x512xi1>, vector<8x512xf32>
    %c496_i32_60 = arith.constant 496 : i32
    %135 = tpu.dynamic_rotate %87 by %c496_i32_60 dim 1 : vector<8x512xf32>, i32 -> vector<8x512xf32>
    %c14_i32_61 = arith.constant 14 : i32
    %136 = vector.broadcast %c14_i32_61 : i32 to vector<8x512xi32>
    %137 = arith.cmpi sle, %95, %136 : vector<8x512xi32>
    %cst_62 = arith.constant 0.000000e+00 : f32
    %138 = vector.broadcast %cst_62 : f32 to vector<8x512xf32>
    %139 = arith.select %137, %135, %138 : vector<8x512xi1>, vector<8x512xf32>
    %c495_i32_63 = arith.constant 495 : i32
    %140 = tpu.dynamic_rotate %87 by %c495_i32_63 dim 1 : vector<8x512xf32>, i32 -> vector<8x512xf32>
    %c14_i32_64 = arith.constant 14 : i32
    %141 = vector.broadcast %c14_i32_64 : i32 to vector<8x512xi32>
    %142 = arith.cmpi sle, %95, %141 : vector<8x512xi32>
    %c14_i32_65 = arith.constant 14 : i32
    %143 = vector.broadcast %c14_i32_65 : i32 to vector<8x512xi32>
    %144 = arith.cmpi sle, %91, %143 : vector<8x512xi32>
    %145 = arith.andi %142, %144 : vector<8x512xi1>
    %cst_66 = arith.constant 0.000000e+00 : f32
    %146 = vector.broadcast %cst_66 : f32 to vector<8x512xf32>
    %147 = arith.select %145, %140, %146 : vector<8x512xi1>, vector<8x512xf32>
    %148 = tpu.concatenate %103, %108, %116, %121, %87, %126, %134, %139, %147 in 0 : vector<8x512xf32>, vector<8x512xf32>, vector<8x512xf32>, vector<8x512xf32>, vector<8x512xf32>, vector<8x512xf32>, vector<8x512xf32>, vector<8x512xf32>, vector<8x512xf32> -> vector<72x512xf32>
    %cst_67 = arith.constant dense<0.000000e+00> : vector<8x512xf32>
    %149 = tpu.matmul %88, %148, %cst_67 {dimension_numbers = #tpu.dot_dimension_numbers<[1], [0], [0], [1], [0, 0, 1, 1], [], []>} : vector<8x72xf32>, vector<72x512xf32>, vector<8x512xf32> -> vector<8x512xf32>
    %c0_68 = arith.constant 0 : index
    %c0_69 = arith.constant 0 : index
    %150 = vector.load %arg5[%c0_68, %c0_69] : memref<8x1xf32, #tpu.memory_space<vmem>>, vector<8x1xf32>
    %c0_70 = arith.constant 0 : index
    %c0_71 = arith.constant 0 : index
    %151 = vector.load %arg6[%c0_70, %c0_71] : memref<8x1xf32, #tpu.memory_space<vmem>>, vector<8x1xf32>
    %cst_72 = arith.constant dense<0.000000e+00> : vector<8xf32>
    %152 = vector.multi_reduction <add>, %149, %cst_72 [1] : vector<8x512xf32> to vector<8xf32>
    %153 = vector.shape_cast %152 : vector<8xf32> to vector<8x1xf32>
    %154 = arith.mulf %149, %149 : vector<8x512xf32>
    %cst_73 = arith.constant dense<0.000000e+00> : vector<8xf32>
    %155 = vector.multi_reduction <add>, %154, %cst_73 [1] : vector<8x512xf32> to vector<8xf32>
    %156 = vector.shape_cast %155 : vector<8xf32> to vector<8x1xf32>
    %cst_74 = arith.constant 0.001953125 : f32
    %157 = vector.broadcast %cst_74 : f32 to vector<8x1xf32>
    %158 = arith.mulf %153, %157 : vector<8x1xf32>
    %cst_75 = arith.constant 0.001953125 : f32
    %159 = vector.broadcast %cst_75 : f32 to vector<8x1xf32>
    %160 = arith.mulf %156, %159 : vector<8x1xf32>
    %161 = arith.mulf %158, %158 : vector<8x1xf32>
    %162 = arith.subf %160, %161 : vector<8x1xf32>
    %cst_76 = arith.constant 9.99999974E-6 : f32
    %163 = vector.broadcast %cst_76 : f32 to vector<8x1xf32>
    %164 = arith.addf %162, %163 : vector<8x1xf32>
    %165 = math.rsqrt %164 : vector<8x1xf32>
    %166 = arith.mulf %165, %150 : vector<8x1xf32>
    %167 = vector.broadcast %158 : vector<8x1xf32> to vector<8x512xf32>
    %168 = arith.subf %149, %167 : vector<8x512xf32>
    %169 = vector.broadcast %166 : vector<8x1xf32> to vector<8x512xf32>
    %170 = arith.mulf %168, %169 : vector<8x512xf32>
    %171 = vector.broadcast %151 : vector<8x1xf32> to vector<8x512xf32>
    %172 = arith.addf %170, %171 : vector<8x512xf32>
    %cst_77 = arith.constant 0.000000e+00 : f32
    %173 = vector.broadcast %cst_77 : f32 to vector<8x512xf32>
    %174 = arith.maximumf %172, %173 : vector<8x512xf32>
    %c0_78 = arith.constant 0 : index
    %c0_79 = arith.constant 0 : index
    %175 = vector.load %arg7[%c0_78, %c0_79] : memref<8x512xf32, #tpu.memory_space<vmem>>, vector<8x512xf32>
    tpu.vector_store %arg7[%c0_78, %c0_79], %174 {strides = array<i32>} : memref<8x512xf32, #tpu.memory_space<vmem>>, vector<8x512xf32>,
    return
  }
}

</mosaic_0001>

<bundles_post_ra>
// kernel: unet_conv_block.1
= control target key start
LH: loop header
LB: loop body
LE: loop exit
PB: predicated region body
PF: predicated region fallthrough
CT: control target
= control target key end

     0   :  { %s1087_s28 = smov 16   ;;  %s1089_s29 = smov 15   ;;  %v1095_v8 = vmov 0.0   ;;  %v29_v9 = vlaneseq  ;;  %v1836_v28 = vmov 0  ;;  %v1840_v43 = vmov 0  ;;  %s1797_s0 = inlined_call_operand.vmem [shape: f32[4,512], index: 0, kind: input, shape index: {}]   ;;  %s1798_s1 = inlined_call_operand.vmem [shape: f32[8,36], index: 1, kind: input, shape index: {}]   ;;  %s1799_s3 = inlined_call_operand.vmem [shape: f32[8,1], index: 3, kind: input, shape index: {}]   ;;  %s1800_s2 = inlined_call_operand.vmem [shape: f32[8,1], index: 2, kind: input, shape index: {}]   ;;  %s1801_s4 = inlined_call_operand.vmem [shape: f32[8,72], index: 4, kind: input, shape index: {}]   ;;  %s1802_s6 = inlined_call_operand.vmem [shape: f32[8,1], index: 6, kind: input, shape index: {}]   ;;  %s1803_s5 = inlined_call_operand.vmem [shape: f32[8,1], index: 5, kind: input, shape index: {}]   ;;  %s1804_s7 = inlined_call_operand.vmem [shape: f32[8,512], index: 7, kind: output, shape index: {}]  }
   0x1   :  { %v1141_v0 = vld [vmem:[%s1797_s0 + $0x8] sm:$0xff]  ;;  %v1146_v1 = vld [vmem:[%s1797_s0] sm:$0xff]  ;;  %s1088_s0 = smov 1   ;;  %s1090_s30 = smov 17   ;;  %365 = vmatprep.mubr.f32.mxu0 %v1095_v8  ;;  %436 = vmatprep.mubr.f32.mxu1 %v1095_v8  ;;  %v1844_v45 = vmov 0  ;;  %v1846_v54 = vmov 0 }
   0x2   :  { %v1150_v2 = vcombine.high %v1141_v0, %v1141_v0  ;;  %v1154_v3 = vcombine.high %v1146_v1, %v1146_v1  ;;  %s1091_s8 = smov 112   ;;  %s1092_s9 = smov 127   ;;  %v1188_v10 = vand.u32 127, %v29_v9  ;;  %v1848_v56 = vmov 0 }
   0x3   :  { %s1093_s10 = smov 113   ;;  %s1094_s11 = smov 111   ;;  %v1850_v61 = vmov 0 }
   0x4   :  { %v949_v4 = vpack.i.bf16 %v1141_v0, %v1150_v2  ;;  %v939_v5 = vpack.i.bf16 %v1154_v3, %v1146_v1  ;;  %v984_v6 = vpack.i.bf16 %v1141_v0, %v1154_v3  ;;  %v994_v7 = vpack.i.bf16 %v1150_v2, %v1146_v1 }
   0x5   :  { %v31_v11 = vadd.s32 128, %v1188_v10  ;;  %v33_v12 = vadd.s32 384, %v1188_v10  ;;  %v1193_v14 = vadd.s32 256, %v1188_v10  ;;  %v38_v15 = vshra.s32 %v1188_v10, 4 }
   0x6   :  { %950 = vrot.lane.b32.xlu1 %v949_v4, %s1087_s28  ;;  %940 = vrot.lane.b32.xlu0 %v939_v5, %s1087_s28  ;;  %vm1808_vm0 = vcmp.lt.s32.totalorder %v1188_v10, 16  ;;  %vm1806_vm1 = vcmp.lt.s32.totalorder %v1188_v10, 1  ;;  %vm1810_vm2 = vcmp.lt.s32.totalorder %v1188_v10, 17  ;;  %vm1809_vm4 = vcmp.lt.s32.totalorder %v1188_v10, 15 }
   0x7   :  { %v39_v13 = vshra.s32 %v31_v11, 4  ;;  %v41_v16 = vshra.s32 %v33_v12, 4  ;;  %v35_v17 = vand.u32 15, %v31_v11  ;;  %v40_v19 = vshra.s32 %v1193_v14, 4 }
   0x8   :  { %v1199_v20 = vand.u32 15, %v38_v15  ;;  %v34_v29 = vand.u32 15, %v1188_v10  ;;  %v36_v30 = vand.u32 15, %v1193_v14  ;;  %v37_v32 = vand.u32 15, %v33_v12 }
   0x9   :  { %v1196_v18 = vand.u32 15, %v39_v13  ;;  %v1204_v23 = vand.u32 15, %v41_v16  ;;  %vm1206_vm3 = vcmp.ge.s32.totalorder %v35_v17, 1  ;;  %v1214_v31 = vand.u32 15, %v40_v19 }
   0xa   :  { %955 = vrot.lane.b32.xlu1 %v949_v4, %s1088_s0  ;;  %945 = vrot.lane.b32.xlu0 %v939_v5, %s1088_s0  ;;  %v1837_v28 = vsel %vm1206_vm3, 4294967295, %v1836_v28  ;;  %vm1812_vm7 = vcmp.ge.s32.totalorder %v1199_v20, 1  ;;  %vm1224_vm9 = vcmp.le.s32.totalorder %v35_v17, 14  ;;  %vm1228_vm10 = vcmp.le.s32.totalorder %v34_v29, 14 }
   0xb   :  { %vm1807_vm5 = vcmp.ge.s32.totalorder %v1196_v18, 1  ;;  %vm1805_vm8 = vcmp.ge.s32.totalorder %v1204_v23, 1  ;;  %v1841_v43 = vsel %vm1228_vm10, 4294967295, %v1840_v43  ;;  %vm1232_vm11 = vcmp.le.s32.totalorder %v37_v32, 14  ;;  %vm1334_vm13 = vmand %vm1812_vm7, %vm1228_vm10 }
   0xc   :  { %vm1236_vm12 = vcmp.ge.s32.totalorder %v34_v29, 1  ;;  %vm1266_vm15 = vmand %vm1807_vm5, %vm1206_vm3  ;;  %vm1272_vm6 = vcmp.ge.s32.totalorder %v37_v32, 1  ;;  %vm1866_vm10 = vcmp.lt.s32.totalorder %v1188_v10, 17 }
   0xd   :  { %v1845_v45 = vsel %vm1236_vm12, 4294967295, %v1844_v45  ;;  %v1847_v54 = vsel %vm1266_vm15, 4294967295, %v1846_v54  ;;  %v1849_v56 = vsel %vm1272_vm6, 4294967295, %v1848_v56  ;;  %vm1284_vm14 = vmand %vm1807_vm5, %vm1224_vm9 }
   0xe   :  { %965 = vrot.lane.b32.xlu1 %v939_v5, %s1089_s29  ;;  %960 = vrot.lane.b32.xlu0 %v939_v5, %s1090_s30  ;;  %v1851_v61 = vsel %vm1284_vm14, 4294967295, %v1850_v61 }
  0x12   :  { %975 = vrot.lane.b32.xlu1 %v949_v4, %s1089_s29  ;;  %970 = vrot.lane.b32.xlu0 %v949_v4, %s1090_s30 }
  0x16   :  { %985 = vrot.lane.b32.xlu1 %v984_v6, %s1091_s8  ;;  %980 = vrot.lane.b32.xlu0 %v984_v6, %s1092_s9 }
  0x1a   :  { %995 = vrot.lane.b32.xlu1 %v994_v7, %s1091_s8  ;;  %990 = vrot.lane.b32.xlu0 %v994_v7, %s1092_s9 }
  0x1e   :  { %1005 = vrot.lane.b32.xlu1 %v994_v7, %s1093_s10  ;;  %1000 = vrot.lane.b32.xlu0 %v984_v6, %s1093_s10  ;;  %v1854_v7 = vmov 0 }
  0x22   :  { %203 = vrot.lane.b32.xlu1 %v1141_v0, %s1094_s11  ;;  %201 = vrot.lane.b32.xlu0 %v1154_v3, %s1094_s11 }
  0x26   :  { %205 = vrot.lane.b32.xlu1 %v1150_v2, %s1094_s11  ;;  %199 = vrot.lane.b32.xlu0 %v1146_v1, %s1094_s11 }
  0x78   :  { %v951_v21 = vpop.permute.xlu1 %950  ;;  %v941_v22 = vpop.permute.xlu0 %940 }
  0x79   :  { %v953_v24 = vunpack.i.h.bf16 %v951_v21  ;;  %v952_v25 = vunpack.i.l.bf16 %v951_v21  ;;  %v943_v26 = vunpack.i.h.bf16 %v941_v22  ;;  %v942_v27 = vunpack.i.l.bf16 %v941_v22 }
  0x7b   :  { %v90_v33 = vsel %vm1808_vm0, %v953_v24, %v952_v25  ;;  %v92_v34 = vsel %vm1808_vm0, %v942_v27, %v943_v26  ;;  %v93_v35 = vsel %vm1808_vm0, %v952_v25, %v942_v27  ;;  %v91_v62 = vsel %vm1808_vm0, %v943_v26, %v953_v24  ;;  %vm1314_vm0 = vmand %vm1812_vm7, %vm1236_vm12 }
  0x7c   :  { %v956_v36 = vpop.permute.xlu1 %955  ;;  %v946_v37 = vpop.permute.xlu0 %945  ;;  %v95_v47 = vsel %vm1807_vm5, %v92_v34, 0.0  ;;  %v1246_v48 = vsel %vm1812_vm7, %v93_v35, 0.0  ;;  %v1250_v49 = vsel %vm1805_vm8, %v90_v33, 0.0  ;;  %vm1298_vm5 = vcmp.ge.s32.totalorder %v36_v30, 1 }
  0x7d   :  { %v958_v38 = vunpack.i.h.bf16 %v956_v36  ;;  %v957_v39 = vunpack.i.l.bf16 %v956_v36  ;;  %v948_v40 = vunpack.i.h.bf16 %v946_v37  ;;  %v947_v41 = vunpack.i.l.bf16 %v946_v37 }
  0x7e   :  { %v225_v63 = vrot.slane %v95_v47, 4  ;;  %v224_v5 = vrot.slane %v1246_v48, 4  ;;  %v227_v6 = vrot.slane %v1250_v49, 4  ;;  %v1855_v7 = vsel %vm1298_vm5, 4294967295, %v1854_v7 }
  0x7f   :  { %v134_v46 = vsel %vm1806_vm1, %v947_v41, %v948_v40  ;;  %v132_v50 = vsel %vm1806_vm1, %v958_v38, %v957_v39  ;;  %v135_v51 = vsel %vm1806_vm1, %v957_v39, %v947_v41  ;;  %vm1292_vm1 = vcmp.le.s32.totalorder %v36_v30, 14 }
  0x80   :  { %v1256_v52 = vpop.permute.xlu1 %965  ;;  %v1258_v53 = vpop.permute.xlu0 %960  ;;  %v137_v55 = vsel %vm1206_vm3, %v134_v46, 0.0  ;;  %v136_v13 = vsel %vm1236_vm12, %v135_v51, 0.0  ;;  %v139_v14 = vsel %vm1272_vm6, %v132_v50, 0.0  ;;  %vm1858_vm8 = vcmp.lt.s32.totalorder %v1188_v10, 1 }
  0x81   :  { %v968_v57 = vunpack.i.h.bf16 %v1256_v52  ;;  %v967_v58 = vunpack.i.l.bf16 %v1256_v52  ;;  %v963_v59 = vunpack.i.h.bf16 %v1258_v53  ;;  %v962_v60 = vunpack.i.l.bf16 %v1258_v53 }
  0x82   :  { %v1324_v15 = vsel %vm1858_vm8, %v948_v40, %v958_v38  ;;  %v237_v22 = vrot.slane %v137_v55, 4  ;;  %v1859_v24 = vmov 0  ;;  %vm1861_vm8 = vcmp.ge.s32.totalorder %v1204_v23, 1 }
  0x83   :  { %v63_v9 = vsel %vm1810_vm2, %v962_v60, %v963_v59  ;;  %v109_v11 = vsel %vm1809_vm4, %v967_v58, %v968_v57  ;;  %v1860_v24 = vsel %vm1334_vm13, 4294967295, %v1859_v24  ;;  %vm1342_vm4 = vmand %vm1861_vm8, %vm1272_vm6  ;;  %vm1864_vm2 = vcmask 1043456  }
  0x84   :  { %v976_v16 = vpop.permute.xlu1 %975  ;;  %v971_v17 = vpop.permute.xlu0 %970  ;;  %v78_v19 = vsel %vm1266_vm15, %v63_v9, 0.0  ;;  %v120_v21 = vsel %vm1284_vm14, %v109_v11, 0.0  ;;  %vm1865_vm14 = vmmov %vm1864_vm2  ;;  %v236_v34 = vrot.slane %v136_v13, 4  ;;  %v239_v35 = vrot.slane %v139_v14, 4 }
  0x85   :  { %v978_v25 = vunpack.i.h.bf16 %v976_v16  ;;  %v977_v26 = vunpack.i.l.bf16 %v976_v16  ;;  %v973_v27 = vunpack.i.h.bf16 %v971_v17  ;;  %v972_v29 = vunpack.i.l.bf16 %v971_v17  ;;  %vm1868_vm6 = vmmov %vm1866_vm10 }
  0x86   :  { %v270_v32 = vsel %vm1864_vm2, %v78_v19, %v225_v63  ;;  %v274_v33 = vsel %vm1865_vm14, %v120_v21, %v237_v22  ;;  %vm1867_vm8 = vcmp.lt.s32.totalorder %v1188_v10, 15  ;;  %vm1869_vm2 = vcmp.ge.s32.totalorder %v1204_v23, 1 }
  0x87   :  { %v864_v36 = vpack.c.bf16 %v274_v33, %v270_v32  ;;  %v64_v37 = vsel %vm1866_vm10, %v972_v29, %v962_v60  ;;  %v110_v38 = vsel %vm1867_vm8, %v977_v26, %v967_v58  ;;  %v61_v39 = vsel %vm1868_vm6, %v973_v27, %v972_v29  ;;  %vm1361_vm14 = vmand %vm1869_vm2, %vm1232_vm11 }
  0x88   :  { %v1870_v40 = vmov 0  ;;  %v986_v41 = vpop.permute.xlu1 %985  ;;  %v981_v46 = vpop.permute.xlu0 %980  ;;  %v77_v47 = vsel %vm1314_vm0, %v64_v37, 0.0  ;;  %v119_v48 = vsel %vm1334_vm13, %v110_v38, 0.0  ;;  %v80_v49 = vsel %vm1342_vm4, %v61_v39, 0.0  ;;  %vm1872_vm6 = vmmov %vm1867_vm8 }
  0x89   :  { %v1871_v40 = vsel %vm1361_vm14, 4294967295, %v1870_v40  ;;  %v107_v50 = vsel %vm1872_vm6, %v978_v25, %v977_v26  ;;  %v988_v51 = vunpack.i.h.bf16 %v986_v41  ;;  %v987_v55 = vunpack.i.l.bf16 %v986_v41  ;;  %865 = vmatprep.subr.bf16.mxu0 %v864_v36 }
  0x8a   :  { %v983_v58 = vunpack.i.h.bf16 %v981_v46  ;;  %v982_v60 = vunpack.i.l.bf16 %v981_v46  ;;  %vm1873_vm10 = vcmask 1043456   ;;  %v122_v11 = vsel %vm1361_vm14, %v107_v50, 0.0 }
  0x8b   :  { %v269_v63 = vsel %vm1873_vm10, %v77_v47, %v224_v5  ;;  %vm1874_vm8 = vmmov %vm1873_vm10  ;;  %vm1876_vm12 = vcmp.lt.s32.totalorder %v1188_v10, 112  ;;  %vm1877_vm15 = vcmp.lt.s32.totalorder %v1188_v10, 127  ;;  %vm1879_vm10 = vcmp.lt.s32.totalorder %v1188_v10, 17 }
  0x8c   :  { %v273_v9 = vsel %vm1874_vm8, %v119_v48, %v236_v34  ;;  %vm1875_vm2 = vmmov %vm1874_vm8  ;;  %v192_v14 = vsel %vm1876_vm12, %v987_v55, %v988_v51  ;;  %v150_v16 = vsel %vm1877_vm15, %v982_v60, %v983_v58  ;;  %v996_v21 = vpop.permute.xlu1 %995  ;;  %v991_v22 = vpop.permute.xlu0 %990  ;;  %v62_v5 = vsel %vm1879_vm10, %v963_v59, %v973_v27 }
  0x8d   :  { %v272_v13 = vsel %vm1875_vm2, %v80_v49, %v227_v6  ;;  %v866_v17 = vpack.c.bf16 %v273_v9, %v269_v63  ;;  %vm1878_vm6 = vmmov %vm1875_vm2  ;;  %vm1880_vm8 = vcmp.ge.s32.totalorder %v1214_v31, 1  ;;  %v1881_v6 = vmov 0 }
  0x8e   :  { %v276_v19 = vsel %vm1878_vm6, %v122_v11, %v239_v35  ;;  %vm1391_vm2 = vmand %vm1880_vm8, %vm1298_vm5  ;;  %vm1884_vm6 = vcmp.le.s32.totalorder %v1196_v18, 14  ;;  %v998_v53 = vunpack.i.h.bf16 %v996_v21  ;;  %v997_v33 = vunpack.i.l.bf16 %v996_v21 }
  0x8f   :  { %v872_v26 = vpack.c.bf16 %v276_v19, %v272_v13  ;;  %v1882_v6 = vsel %vm1391_vm2, 4294967295, %v1881_v6  ;;  %vm1883_vm12 = vmmov %vm1880_vm8  ;;  %v1400_v32 = vsel %vm1884_vm6, %v192_v14, 0.0  ;;  %867 = vmatpush1.bf16.msra.mxu0 %v866_v17  ;;  %v1886_v59 = vmov 0 }
  0x90   :  { %v96_v29 = vsel %vm1883_vm12, %v91_v62, 0.0  ;;  %vm1885_vm10 = vmmov %vm1880_vm8  ;;  %v138_v62 = vsel %vm1298_vm5, %v1324_v15, 0.0  ;;  %v154_v27 = vsel %vm1224_vm9, %v150_v16, 0.0  ;;  %v993_v34 = vunpack.i.h.bf16 %v991_v22  ;;  %v1006_v46 = vpop.permute.xlu1 %1005  ;;  %v1001_v47 = vpop.permute.xlu0 %1000 }
  0x91   :  { %vm1406_vm8 = vmand %vm1885_vm10, %vm1292_vm1  ;;  %v992_v35 = vunpack.i.l.bf16 %v991_v22  ;;  %873 = vmatprep.subr.bf16.mxu1 %v872_v26  ;;  %vm1888_vm12 = vcmp.lt.s32.totalorder %v1188_v10, 15  ;;  %vm1889_vm10 = vcmp.lt.s32.totalorder %v1188_v10, 112  ;;  %v79_v39 = vsel %vm1391_vm2, %v62_v5, 0.0 }
  0x92   :  { %v1887_v59 = vsel %vm1406_vm8, 4294967295, %v1886_v59  ;;  %v108_v36 = vsel %vm1888_vm12, %v968_v57, %v978_v25  ;;  %v191_v37 = vsel %vm1889_vm10, %v988_v51, %v998_v53  ;;  %vm1890_vm15 = vmmov %vm1889_vm10  ;;  %vm1892_vm14 = vcmp.lt.s32.totalorder %v1188_v10, 127 }
  0x93   :  { %v193_v38 = vsel %vm1890_vm15, %v997_v33, %v987_v55  ;;  %vm1891_vm7 = vmmov %vm1889_vm10  ;;  %v149_v52 = vsel %vm1892_vm14, %v983_v58, %v993_v34  ;;  %v121_v57 = vsel %vm1406_vm8, %v108_v36, 0.0  ;;  %v226_v25 = vrot.slane %v96_v29, 4 }
  0x94   :  { %v194_v15 = vsel %vm1891_vm7, %v998_v53, %v997_v33  ;;  %v238_v41 = vrot.slane %v138_v62, 4  ;;  %v261_v48 = vrot.slane %v1400_v32, 4  ;;  %v249_v49 = vrot.slane %v154_v27, 4  ;;  %vm1894_vm7 = vmmov %vm1892_vm14  ;;  %v204_v5 = vpop.permute.xlu1 %203  ;;  %v202_v29 = vpop.permute.xlu0 %201 }
  0x95   :  { %vm1893_vm15 = vcmp.le.s32.totalorder %v1204_v23, 14  ;;  %v151_v51 = vsel %vm1894_vm7, %v992_v35, %v982_v60  ;;  %vm1895_vm12 = vcmp.le.s32.totalorder %v1199_v20, 14  ;;  %vm1896_vm14 = vcmp.le.s32.totalorder %v1214_v31, 14  ;;  %vm1897_vm10 = vmmov %vm1894_vm7 }
  0x96   :  { %v198_v50 = vsel %vm1893_vm15, %v194_v15, 0.0  ;;  %v195_v55 = vsel %vm1895_vm12, %v193_v38, 0.0  ;;  %v197_v58 = vsel %vm1896_vm14, %v191_v37, 0.0  ;;  %v152_v63 = vsel %vm1897_vm10, %v993_v34, %v992_v35 }
  0x97   :  { %vm1898_vm6 = vcmask 1043456   ;;  %vm1899_vm8 = vcmp.le.s32.totalorder %v1196_v18, 14  ;;  %v1900_v11 = vmov 0  ;;  %vm1902_vm15 = vnez %v1841_v43 }
  0x98   :  { %v271_v9 = vsel %vm1898_vm6, %v79_v39, %v226_v25  ;;  %vm1448_vm13 = vmand %vm1899_vm8, %vm1206_vm3  ;;  %v153_v60 = vsel %vm1902_vm15, %v151_v51, 0.0  ;;  %v155_v13 = vsel %vm1292_vm1, %v149_v52, 0.0  ;;  %v156_v14 = vsel %vm1232_vm11, %v152_v63, 0.0 }
  0x99   :  { %v1901_v11 = vsel %vm1448_vm13, 4294967295, %v1900_v11  ;;  %vm1903_vm7 = vmmov %vm1898_vm6  ;;  %vm1904_vm6 = vnez %v1849_v56  ;;  %vm1905_vm12 = vcmp.le.s32.totalorder %v1204_v23, 14  ;;  %v1906_v17 = vmov 0 }
  0x9a   :  { %v275_v16 = vsel %vm1903_vm7, %v121_v57, %v238_v41  ;;  %vm1463_vm14 = vmand %vm1905_vm12, %vm1904_vm6  ;;  %v263_v19 = vrot.slane %v198_v50, 4  ;;  %v1008_v22 = vunpack.i.h.bf16 %v1006_v46  ;;  %v1007_v26 = vunpack.i.l.bf16 %v1006_v46  ;;  %v206_v41 = vpop.permute.xlu1 %205  ;;  %v200_v46 = vpop.permute.xlu0 %199 }
  0x9b   :  { %v1907_v17 = vsel %vm1463_vm14, 4294967295, %v1906_v17  ;;  %v874_v21 = vpack.c.bf16 %v275_v16, %v271_v9  ;;  %vm1908_vm8 = vnez %v1845_v45  ;;  %vm1909_vm10 = vcmp.le.s32.totalorder %v1199_v20, 14 }
  0x9c   :  { %vm1471_vm3 = vmand %vm1909_vm10, %vm1908_vm8  ;;  %v1910_v32 = vmov 0  ;;  %v260_v53 = vrot.slane %v195_v55, 4  ;;  %v262_v33 = vrot.slane %v197_v58, 4  ;;  %v1003_v62 = vunpack.i.h.bf16 %v1001_v47 }
  0x9d   :  { %v1911_v32 = vsel %vm1471_vm3, 4294967295, %v1910_v32  ;;  %v1002_v27 = vunpack.i.l.bf16 %v1001_v47  ;;  %vm1912_vm7 = vcmp.le.s32.totalorder %v1214_v31, 14  ;;  %v1913_v34 = vmov 0  ;;  %875 = vmatpush1.bf16.msra.mxu1 %v874_v21 }
  0x9e   :  { %vm1479_vm12 = vmand %vm1912_vm7, %vm1298_vm5  ;;  %v248_v35 = vrot.slane %v153_v60, 4  ;;  %v250_v36 = vrot.slane %v155_v13, 4  ;;  %v251_v37 = vrot.slane %v156_v14, 4  ;;  %vm1915_vm10 = vcmp.lt.s32.totalorder %v1188_v10, 113 }
  0x9f   :  { %v1914_v34 = vsel %vm1479_vm12, 4294967295, %v1913_v34  ;;  %v169_v38 = vsel %vm1915_vm10, %v1008_v22, %v1007_v26  ;;  %vm1916_vm6 = vmmov %vm1915_vm10  ;;  %vm1919_vm7 = vcmp.le.s32.totalorder %v1196_v18, 14  ;;  %v1920_v25 = vmov 0 }
  0xa0   :  { %v166_v15 = vsel %vm1916_vm6, %v1003_v62, %v1008_v22  ;;  %vm1917_vm8 = vmmov %vm1916_vm6  ;;  %v181_v57 = vsel %vm1463_vm14, %v169_v38, 0.0  ;;  %v1925_v63 = vmov 0 }
  0xa1   :  { %v167_v39 = vsel %vm1917_vm8, %v1002_v27, %v1003_v62  ;;  %vm1918_vm2 = vmmov %vm1916_vm6  ;;  %vm1922_vm6 = vcmask 1043456   ;;  %v180_v55 = vsel %vm1479_vm12, %v166_v15, 0.0  ;;  %vm1924_vm8 = vcmp.le.s32.totalorder %v1204_v23, 14 }
  0xa2   :  { %v168_v52 = vsel %vm1918_vm2, %v1007_v26, %v1002_v27  ;;  %vm1497_vm5 = vmand %vm1919_vm7, %vm1224_vm9  ;;  %v179_v47 = vsel %vm1448_vm13, %v167_v39, 0.0  ;;  %v284_v50 = vsel %vm1922_vm6, %v181_v57, %v263_v19  ;;  %vm1923_vm2 = vcmp.lt.s32.totalorder %v1188_v10, 111 }
  0xa3   :  { %v1921_v25 = vsel %vm1497_vm5, 4294967295, %v1920_v25  ;;  %v178_v51 = vsel %vm1471_vm3, %v168_v52, 0.0  ;;  %v209_v58 = vsel %vm1923_vm2, %v202_v29, %v204_v5  ;;  %vm1514_vm10 = vmand %vm1924_vm8, %vm1232_vm11  ;;  %v278_v60 = vsel %vm1922_vm6, %v1154_v3, %v249_v49 }
  0xa4   :  { %v1926_v63 = vsel %vm1514_vm10, 4294967295, %v1925_v63  ;;  %vm1927_vm7 = vmmov %vm1923_vm2  ;;  %v217_v3 = vsel %vm1497_vm5, %v209_v58, 0.0  ;;  %v1096_v58 = vmov 0   ;;  %vm1097_vm5 = vmmov 1  }
  0xa5   :  { %v211_v9 = vsel %vm1927_vm7, %v206_v41, %v200_v46  ;;  %vm1928_vm14 = vmmov %vm1922_vm6  ;;  %1009 = vset.pattern.permute.xlu0 %v1096_v58  ;;  %1010 = vset.pattern.permute.xlu1 %v1096_v58 }
  0xa6   :  { %v282_v13 = vsel %vm1928_vm14, %v179_v47, %v261_v48  ;;  %vm1929_vm12 = vmmov %vm1922_vm6  ;;  %v219_v48 = vsel %vm1514_vm10, %v211_v9, 0.0  ;;  %vm1934_vm14 = vcmp.le.s32.totalorder %v1214_v31, 14 }
  0xa7   :  { %v868_v14 = vpack.c.bf16 %v282_v13, %v278_v60  ;;  %v280_v16 = vsel %vm1929_vm12, %v1150_v2, %v251_v37  ;;  %vm1930_vm2 = vmmov %vm1922_vm6 }
  0xa8   :  { %v277_v19 = vsel %vm1930_vm2, %v1146_v1, %v248_v35  ;;  %v876_v21 = vpack.c.bf16 %v284_v50, %v280_v16  ;;  %vm1931_vm8 = vmmov %vm1930_vm2  ;;  %v1935_v1 = vmov 0 }
  0xa9   :  { %v281_v22 = vsel %vm1931_vm8, %v178_v51, %v260_v53  ;;  %vm1932_vm3 = vmmov %vm1930_vm2  ;;  %869 = vmatprep.subr.bf16.mxu0 %v868_v14  ;;  %v1939_v53 = vmov 0 }
  0xaa   :  { %v279_v26 = vsel %vm1932_vm3, %v1141_v0, %v250_v36  ;;  %vm1933_vm13 = vmmov %vm1930_vm2  ;;  %v870_v49 = vpack.c.bf16 %v281_v22, %v277_v19  ;;  %877 = vmatprep.subr.bf16.mxu1 %v876_v21 }
  0xab   :  { %v283_v62 = vsel %vm1933_vm13, %v180_v55, %v262_v33  ;;  %vm1539_vm12 = vmand %vm1934_vm14, %vm1292_vm1  ;;  %vm1938_vm13 = vcmp.le.s32.totalorder %v1199_v20, 14  ;;  %vm285_vm14 = vcmask 293888  }
  0xac   :  { %v878_v2 = vpack.c.bf16 %v283_v62, %v279_v26  ;;  %v1936_v1 = vsel %vm1539_vm12, 4294967295, %v1935_v1  ;;  %vm1937_vm3 = vmmov %vm1927_vm7  ;;  %871 = vmatpush1.bf16.msra.mxu0 %v870_v49 }
  0xad   :  { %v208_v0 = vsel %vm1937_vm3, %v204_v5, %v206_v41  ;;  %vm1549_vm7 = vmand %vm1938_vm13, %vm1902_vm15  ;;  %824 = vmatprep.subr.msk.mxu0 %vm1930_vm2, %v217_v3  ;;  %v28_v5 = vld [vmem:[%s1798_s1] sm:$0xff] }
  0xae   :  { %v1940_v53 = vsel %vm1549_vm7, 4294967295, %v1939_v53  ;;  %vm1941_vm6 = vmmov %vm1937_vm3  ;;  %879 = vmatpush1.bf16.msra.mxu1 %v878_v2  ;;  %v218_v27 = vsel %vm1539_vm12, %v208_v0, 0.0 }
  0xaf   :  { %v210_v33 = vsel %vm1941_vm6, %v200_v46, %v202_v29  ;;  %vm1942_vm8 = vmmov %vm1930_vm2  ;;  %vm1945_vm6 = vcmp.lt.s32.totalorder %v1188_v10, 17 }
  0xb0   :  { %827 = vmatprep.subr.msk.mxu1 %vm1942_vm8, %v219_v48  ;;  %v216_v35 = vsel %vm1549_vm7, %v210_v33, 0.0  ;;  %vm1943_vm3 = vmmov %vm1930_vm2  ;;  %v443_v48 = vld [vmem:[%s1800_s2] sm:$0xff]  ;;  %vm1947_vm8 = vnez %v1847_v54 }
  0xb1   :  { %825 = vmatpush1.msk.msra.mxu0 %vm1943_vm3, %v216_v35  ;;  %vm1944_vm13 = vmmov %vm1930_vm2  ;;  %vm1946_vm2 = vcmp.lt.s32.totalorder %v1188_v10, 16 }
  0xb2   :  { %828 = vmatpush1.msk.msra.mxu1 %vm1944_vm13, %v218_v27  ;;  %826 = vmatmul.mubr.msk.f32.vlgmr.msra.gmra.mrb[0].mxu0 %vm285_vm14, %v28_v5  ;;  %vm1949_vm13 = vcmp.ge.s32.totalorder %v1199_v20, 1 }
  0xb3   :  { %829 = vmatmul.mubr.msk.f32.vlgmr.msra.gmra.mrb[0].mxu1 %vm285_vm14, %v28_v5  ;;  %689 = vmatprep.mubr.f32.mxu0 %v1095_v8  ;;  %vm1948_vm14 = vcmp.ge.s32.totalorder %v1196_v18, 1 }
  0xb4   :  { %760 = vmatprep.mubr.f32.mxu1 %v1095_v8  ;;  %v444_v8 = vld [vmem:[%s1799_s3] sm:$0xff]  ;;  %vm881_vm3 = vmpackc.low %vm1948_vm14, %vm1947_vm8  ;;  %vm1954_vm14 = vcmp.lt.s32.totalorder %v1188_v10, 16 }
 0x185   :  { %v367_v29 = vpop.f32.mrb[0].mxu0 }
 0x186   :  { %v438_v36 = vpop.f32.mrb[0].mxu1  ;;  %v450_v37 = vmul.f32 %v367_v29, %v367_v29  ;;  %v369_v38 = vpop.f32.mrb[1].mxu0 }
 0x187   :  { %v440_v15 = vpop.f32.mrb[1].mxu1  ;;  %v445_v39 = vadd.f32 %v369_v38, %v367_v29  ;;  %v451_v52 = vmul.f32 %v369_v38, %v369_v38  ;;  %v452_v57 = vmul.f32 %v438_v36, %v438_v36 }
 0x188   :  { %v453_v50 = vmul.f32 %v440_v15, %v440_v15 }
 0x189   :  { %v446_v41 = vadd.f32 %v445_v39, %v438_v36  ;;  %v454_v46 = vadd.f32 %v451_v52, %v450_v37 }
 0x18b   :  { %v447_v47 = vadd.f32 %v446_v41, %v440_v15  ;;  %v455_v51 = vadd.f32 %v454_v46, %v452_v57 }
 0x18d   :  { %448 = vadd.xlane.f32.xlu0 %v447_v47  ;;  %v456_v55 = vadd.f32 %v455_v51, %v453_v50 }
 0x18f   :  { %457 = vadd.xlane.f32.xlu1 %v456_v55 }
 0x1a0   :  { %481 = vperm.xlu1 %1010, %v444_v8  }
 0x21a   :  { %v449_v9 = vpop.xlane.xlu0 %448 }
 0x21b   :  { %v459_v60 = vmul.f32 0.001953125, %v449_v9 }
 0x21c   :  { %v458_v13 = vpop.xlane.xlu1 %457 }
 0x21d   :  { %v460_v14 = vmul.f32 0.001953125, %v458_v13  ;;  %v461_v16 = vmul.f32 %v459_v60, %v459_v60  ;;  %v466_v19 = vsub.f32 %v367_v29, %v459_v60  ;;  %v467_v21 = vsub.f32 %v369_v38, %v459_v60 }
 0x21e   :  { %v468_v22 = vsub.f32 %v438_v36, %v459_v60  ;;  %v469_v26 = vsub.f32 %v440_v15, %v459_v60 }
 0x21f   :  { %v462_v62 = vsub.f32 %v460_v14, %v461_v16 }
 0x220   :  { %v482_v33 = vpop.permute.xlu1 %481 }
 0x221   :  { %v463_v3 = vadd.f32 1e-05, %v462_v62 }
 0x223   :  { %1083 = vrsqrt.f32 %v463_v3 }
 0x22d   :  { %v1084_v49 = vpop.eup %1083 }
 0x22e   :  { %v465_v2 = vmul.f32 %v1084_v49, %v443_v48 }
 0x230   :  { %472 = vperm.xlu0 %1009, %v465_v2  }
 0x2af   :  { %v473_v0 = vpop.permute.xlu0 %472 }
 0x2b0   :  { %v475_v5 = vmul.f32 %v473_v0, %v466_v19  ;;  %v476_v27 = vmul.f32 %v473_v0, %v467_v21  ;;  %v477_v35 = vmul.f32 %v473_v0, %v468_v22  ;;  %v478_v37 = vmul.f32 %v473_v0, %v469_v26 }
 0x2b2   :  { %v484_v29 = vadd.f32 %v482_v33, %v475_v5  ;;  %v485_v38 = vadd.f32 %v482_v33, %v476_v27  ;;  %v486_v36 = vadd.f32 %v482_v33, %v477_v35  ;;  %v487_v15 = vadd.f32 %v482_v33, %v478_v37 }
 0x2b4   :  { %v1574_v39 = vmax.f32 %v484_v29, 0.0  ;;  %v1576_v52 = vmax.f32 %v485_v38, 0.0  ;;  %v1578_v57 = vmax.f32 %v486_v36, 0.0  ;;  %v1580_v41 = vmax.f32 %v487_v15, 0.0 }
 0x2b6   :  { %v1041_v46 = vpack.i.bf16 %v1578_v57, %v1580_v41  ;;  %v1011_v47 = vpack.i.bf16 %v1576_v52, %v1574_v39  ;;  %v1051_v50 = vpack.i.bf16 %v1578_v57, %v1576_v52  ;;  %v1071_v51 = vpack.i.bf16 %v1580_v41, %v1574_v39 }
 0x2b8   :  { %1042 = vrot.lane.b32.xlu0 %v1041_v46, %s1089_s29  ;;  %1012 = vrot.lane.b32.xlu1 %v1011_v47, %s1090_s30 }
 0x2bc   :  { %1052 = vrot.lane.b32.xlu0 %v1051_v50, %s1092_s9  ;;  %1017 = vrot.lane.b32.xlu1 %v1011_v47, %s1087_s28 }
 0x2c0   :  { %1062 = vrot.lane.b32.xlu0 %v1051_v50, %s1093_s10  ;;  %1022 = vrot.lane.b32.xlu1 %v1041_v46, %s1090_s30 }
 0x2c4   :  { %1072 = vrot.lane.b32.xlu0 %v1071_v51, %s1093_s10  ;;  %1027 = vrot.lane.b32.xlu1 %v1041_v46, %s1087_s28 }
 0x2c8   :  { %607 = vrot.lane.b32.xlu0 %v1576_v52, %s1094_s11  ;;  %1032 = vrot.lane.b32.xlu1 %v1011_v47, %s1089_s29 }
 0x2cc   :  { %605 = vrot.lane.b32.xlu0 %v1574_v39, %s1094_s11  ;;  %1037 = vrot.lane.b32.xlu1 %v1011_v47, %s1088_s0 }
 0x2d0   :  { %1047 = vrot.lane.b32.xlu1 %v1041_v46, %s1088_s0 }
 0x2d4   :  { %1057 = vrot.lane.b32.xlu1 %v1071_v51, %s1092_s9 }
 0x2d8   :  { %1067 = vrot.lane.b32.xlu1 %v1051_v50, %s1091_s8 }
 0x2dc   :  { %1077 = vrot.lane.b32.xlu1 %v1071_v51, %s1091_s8 }
 0x2e0   :  { %609 = vrot.lane.b32.xlu1 %v1578_v57, %s1094_s11 }
 0x2e4   :  { %611 = vrot.lane.b32.xlu1 %v1580_v41, %s1094_s11 }
 0x32a   :  { %v1013_v55 = vpop.permute.xlu1 %1012  ;;  %v1043_v62 = vpop.permute.xlu0 %1042 }
 0x32b   :  { %v1015_v58 = vunpack.i.h.bf16 %v1013_v55  ;;  %v1014_v8 = vunpack.i.l.bf16 %v1013_v55  ;;  %v1045_v51 = vunpack.i.h.bf16 %v1043_v62  ;;  %v1044_v55 = vunpack.i.l.bf16 %v1043_v62 }
 0x32d   :  { %v503_v14 = vsel %vm1945_vm6, %v1014_v8, %v1015_v58  ;;  %vm1624_vm6 = vmpackc.low %vm1949_vm13, %vm1314_vm0 }
 0x32e   :  { %v1018_v9 = vpop.permute.xlu1 %1017  ;;  %vm1957_vm0 = vmmov %vm1954_vm14  ;;  %v1053_v38 = vpop.permute.xlu0 %1052 }
 0x32f   :  { %v1020_v60 = vunpack.i.h.bf16 %v1018_v9  ;;  %v1019_v13 = vunpack.i.l.bf16 %v1018_v9  ;;  %vm1958_vm13 = vmmov %vm1957_vm0 }
 0x331   :  { %v519_v16 = vsel %vm1946_vm2, %v1019_v13, %v1020_v60  ;;  %vm1952_vm2 = vcmp.lt.s32.totalorder %v1188_v10, 17 }
 0x332   :  { %v880_v19 = vpack.c.bf16 %v519_v16, %v503_v14  ;;  %v1023_v21 = vpop.permute.xlu1 %1022  ;;  %vm1953_vm8 = vmmov %vm1952_vm2 }
 0x333   :  { %v1025_v22 = vunpack.i.h.bf16 %v1023_v21  ;;  %v1024_v26 = vunpack.i.l.bf16 %v1023_v21  ;;  %vm1956_vm10 = vmmov %vm1952_vm2 }
 0x334   :  { %882 = vmatprep.subr.msk.bf16.mxu0 %vm881_vm3, %v880_v19  ;;  %vm1955_vm3 = vcmp.ge.s32.totalorder %v1204_v23, 1 }
 0x335   :  { %v501_v54 = vsel %vm1952_vm2, %v1025_v22, %v1024_v26  ;;  %v502_v0 = vsel %vm1953_vm8, %v1015_v58, %v1025_v22  ;;  %vm905_vm12 = vmpackc.low %vm1955_vm3, %vm1342_vm4  ;;  %v504_v12 = vsel %vm1956_vm10, %v1024_v26, %v1014_v8  ;;  %vm1959_vm2 = vnez %v1882_v6 }
 0x336   :  { %v1028_v3 = vpop.permute.xlu1 %1027  ;;  %vm1960_vm8 = vcmp.ge.s32.totalorder %v1214_v31, 1  ;;  %v1055_v58 = vunpack.i.h.bf16 %v1053_v38  ;;  %v1054_v6 = vunpack.i.l.bf16 %v1053_v38  ;;  %vm1961_vm4 = vcmp.lt.s32.totalorder %v1188_v10, 15 }
 0x337   :  { %v1030_v48 = vunpack.i.h.bf16 %v1028_v3  ;;  %v1029_v49 = vunpack.i.l.bf16 %v1028_v3  ;;  %vm1962_vm10 = vcmp.lt.s32.totalorder %v1188_v10, 1  ;;  %vm1964_vm3 = vnez %v1837_v28  ;;  %vm1971_vm7 = vmmov %vm1961_vm4 }
 0x339   :  { %v517_v33 = vsel %vm1954_vm14, %v1030_v48, %v1029_v49  ;;  %v518_v5 = vsel %vm1957_vm0, %v1020_v60, %v1030_v48  ;;  %v520_v27 = vsel %vm1958_vm13, %v1029_v49, %v1019_v13  ;;  %vm908_vm14 = vmpackc.low %vm1960_vm8, %vm1959_vm2  ;;  %v1063_v60 = vpop.permute.xlu0 %1062  ;;  %vm1966_vm13 = vnez %v1845_v45 }
 0x33a   :  { %v904_v35 = vpack.c.bf16 %v517_v33, %v501_v54  ;;  %v1033_v37 = vpop.permute.xlu1 %1032  ;;  %v883_v30 = vpack.c.bf16 %v520_v27, %v504_v12  ;;  %v907_v29 = vpack.c.bf16 %v518_v5, %v502_v0  ;;  %vm1967_vm8 = vmmov %vm1961_vm4  ;;  %vm1972_vm2 = vcmp.lt.s32.totalorder %v1188_v10, 1 }
 0x33b   :  { %v1035_v36 = vunpack.i.h.bf16 %v1033_v37  ;;  %v1034_v15 = vunpack.i.l.bf16 %v1033_v37  ;;  %v533_v21 = vsel %vm1967_vm8, %v1045_v51, %v1044_v55  ;;  %vm1973_vm8 = vmmov %vm1972_vm2  ;;  %v1065_v27 = vunpack.i.h.bf16 %v1063_v60 }
 0x33c   :  { %906 = vmatprep.subr.msk.bf16.mxu1 %vm905_vm12, %v904_v35  ;;  %885 = vmatpush1.bf16.msk.msra.mxu0 %vm1624_vm6, %v883_v30  ;;  %vm1963_vm12 = vnez %v1851_v61  ;;  %vm1965_vm6 = vnez %v1860_v24 }
 0x33d   :  { %909 = vmatpush1.bf16.msk.msra.mxu1 %vm908_vm14, %v907_v29  ;;  %v535_v8 = vsel %vm1961_vm4, %v1034_v15, %v1035_v36  ;;  %vm887_vm0 = vmpackc.low %vm1964_vm3, %vm1963_vm12  ;;  %vm1968_vm14 = vcmp.lt.s32.totalorder %v1188_v10, 127  ;;  %v534_v28 = vsel %vm1961_vm4, %v1035_v36, %v1045_v51  ;;  %vm1970_vm12 = vnez %v1849_v56  ;;  %v1073_v35 = vpop.permute.xlu0 %1072 }
 0x33e   :  { %v1038_v46 = vpop.permute.xlu1 %1037  ;;  %v566_v22 = vsel %vm1968_vm14, %v1054_v6, %v1055_v58  ;;  %v536_v61 = vsel %vm1971_vm7, %v1044_v55, %v1034_v15  ;;  %vm1974_vm14 = vmmov %vm1972_vm2  ;;  %vm1977_vm7 = vnez %v1887_v59  ;;  %v1075_v29 = vunpack.i.h.bf16 %v1073_v35 }
 0x33f   :  { %v1040_v47 = vunpack.i.h.bf16 %v1038_v46  ;;  %v1039_v50 = vunpack.i.l.bf16 %v1038_v46  ;;  %v892_v33 = vpack.c.bf16 %v566_v22, %v1576_v52  ;;  %v1074_v38 = vunpack.i.l.bf16 %v1073_v35  ;;  %v767_v35 = vld [vmem:[%s1803_s5] sm:$0xff] }
 0x341   :  { %v551_v9 = vsel %vm1962_vm10, %v1039_v50, %v1040_v47  ;;  %vm1969_vm10 = vnez %v1871_v40  ;;  %v608_v4 = vpop.permute.xlu0 %607 }
 0x342   :  { %v886_v13 = vpack.c.bf16 %v551_v9, %v535_v8  ;;  %v1048_v14 = vpop.permute.xlu1 %1047  ;;  %vm911_vm3 = vmpackc.low %vm1970_vm12, %vm1969_vm10  ;;  %vm1986_vm12 = vcmp.lt.s32.totalorder %v1188_v10, 112 }
 0x343   :  { %v1050_v16 = vunpack.i.h.bf16 %v1048_v14  ;;  %v1049_v19 = vunpack.i.l.bf16 %v1048_v14  ;;  %vm920_vm10 = vmpackc.low %vm1292_vm1, %vm1097_vm5 }
 0x344   :  { %888 = vmatprep.subr.msk.bf16.mxu0 %vm887_vm0, %v886_v13  ;;  %vm1683_vm0 = vmpackc.low %vm1224_vm9, %vm1097_vm5 }
 0x345   :  { %v549_v26 = vsel %vm1972_vm2, %v1050_v16, %v1049_v19  ;;  %v550_v62 = vsel %vm1973_vm8, %v1040_v47, %v1050_v16  ;;  %v552_v3 = vsel %vm1974_vm14, %v1049_v19, %v1039_v50  ;;  %vm1978_vm2 = vnez %v1855_v7  ;;  %vm1979_vm9 = vmpackc.low %vm1966_vm13, %vm1965_vm6  ;;  %v606_v8 = vpop.permute.xlu0 %605 }
 0x346   :  { %v889_v49 = vpack.c.bf16 %v552_v3, %v536_v61  ;;  %v910_v2 = vpack.c.bf16 %v549_v26, %v533_v21  ;;  %v913_v54 = vpack.c.bf16 %v550_v62, %v534_v28  ;;  %v1058_v0 = vpop.permute.xlu1 %1057  ;;  %vm914_vm4 = vmpackc.low %vm1978_vm2, %vm1977_vm7  ;;  %v1064_v7 = vunpack.i.l.bf16 %v1063_v60 }
 0x347   :  { %v1060_v12 = vunpack.i.h.bf16 %v1058_v0  ;;  %v1059_v5 = vunpack.i.l.bf16 %v1058_v0  ;;  %vm1705_vm8 = vmpackc.low %vm1902_vm15, %vm1097_vm5  ;;  %vm1982_vm14 = vcmp.lt.s32.totalorder %v1188_v10, 127  ;;  %vm1991_vm2 = vnez %v1911_v32 }
 0x348   :  { %891 = vmatpush1.bf16.msk.msra.mxu0 %vm1979_vm9, %v889_v49  ;;  %912 = vmatprep.subr.msk.bf16.mxu1 %vm911_vm3, %v910_v2  ;;  %vm1983_vm6 = vmmov %vm1982_vm14  ;;  %vm1987_vm3 = vnez %v1901_v11 }
 0x349   :  { %v565_v45 = vsel %vm1982_vm14, %v1055_v58, %v1060_v12  ;;  %v567_v24 = vsel %vm1983_vm6, %v1059_v5, %v1054_v6  ;;  %vm1984_vm13 = vmmov %vm1983_vm6  ;;  %894 = vmatprep.subr.msk.bf16.mxu0 %vm1683_vm0, %v892_v33  ;;  %915 = vmatpush1.bf16.msk.msra.mxu1 %vm914_vm4, %v913_v54  ;;  %vm1988_vm0 = vcmp.le.s32.totalorder %v1196_v18, 14  ;;  %vm1992_vm4 = vcmp.le.s32.totalorder %v1199_v20, 14 }
 0x34a   :  { %v568_v56 = vsel %vm1984_vm13, %v1060_v12, %v1059_v5  ;;  %vm917_vm15 = vmpackc.low %vm1232_vm11, %vm1097_vm5  ;;  %v919_v43 = vpack.c.bf16 %v565_v45, %v1578_v57  ;;  %v895_v40 = vpack.c.bf16 %v567_v24, %v1574_v39  ;;  %v1068_v52 = vpop.permute.xlu1 %1067  ;;  %vm1985_vm11 = vcmp.lt.s32.totalorder %v1188_v10, 113 }
 0x34b   :  { %v916_v59 = vpack.c.bf16 %v568_v56, %v1580_v41  ;;  %v1070_v37 = vunpack.i.h.bf16 %v1068_v52  ;;  %v1069_v30 = vunpack.i.l.bf16 %v1068_v52  ;;  %v582_v44 = vsel %vm1985_vm11, %v1064_v7, %v1065_v27  ;;  %vm899_vm1 = vmpackc.low %vm1988_vm0, %vm1987_vm3 }
 0x34c   :  { %897 = vmatpush1.bf16.msk.msra.mxu0 %vm1705_vm8, %v895_v40  ;;  %vm1989_vm5 = vmmov %vm1985_vm11  ;;  %vm2000_vm3 = vcmp.le.s32.totalorder %v1214_v31, 14 }
 0x34d   :  { %918 = vmatprep.subr.msk.bf16.mxu1 %vm917_vm15, %v916_v59  ;;  %v598_v39 = vsel %vm1986_vm12, %v1069_v30, %v1070_v37  ;;  %v581_v46 = vsel %vm1989_vm5, %v1065_v27, %v1075_v29  ;;  %vm1990_vm7 = vmmov %vm1989_vm5  ;;  %vm1997_vm15 = vnez %v1907_v17  ;;  %v492_v17 = vld [vmem:[%s1801_s4] sm:$0xff] }
 0x34e   :  { %921 = vmatpush1.bf16.msk.msra.mxu1 %vm920_vm10, %v919_v43  ;;  %v898_v57 = vpack.c.bf16 %v598_v39, %v582_v44  ;;  %v1078_v41 = vpop.permute.xlu1 %1077  ;;  %v583_v47 = vsel %vm1990_vm7, %v1074_v38, %v1064_v7  ;;  %vm902_vm9 = vmpackc.low %vm1992_vm4, %vm1991_vm2  ;;  %vm1998_vm10 = vcmp.le.s32.totalorder %v1204_v23, 14  ;;  %vm621_vm7 = vcmask 588800  }
 0x34f   :  { %v1080_v36 = vunpack.i.h.bf16 %v1078_v41  ;;  %v1079_v15 = vunpack.i.l.bf16 %v1078_v41  ;;  %vm1993_vm8 = vmmov %vm1989_vm5  ;;  %vm2002_vm5 = vnez %v1921_v25 }
 0x350   :  { %900 = vmatprep.subr.msk.bf16.mxu0 %vm899_vm1, %v898_v57  ;;  %v584_v18 = vsel %vm1993_vm8, %v1075_v29, %v1074_v38  ;;  %vm1994_vm14 = vmmov %vm1986_vm12  ;;  %vm2001_vm1 = vcmp.lt.s32.totalorder %v1188_v10, 111 }
 0x351   :  { %v597_v11 = vsel %vm1994_vm14, %v1070_v37, %v1080_v36  ;;  %vm1995_vm6 = vmmov %vm1986_vm12  ;;  %vm1999_vm12 = vnez %v1914_v34  ;;  %vm2007_vm14 = vnez %v1926_v63 }
 0x352   :  { %v599_v50 = vsel %vm1995_vm6, %v1079_v15, %v1069_v30  ;;  %vm1996_vm13 = vmmov %vm1995_vm6  ;;  %v925_v55 = vpack.c.bf16 %v597_v11, %v581_v46  ;;  %v610_v58 = vpop.permute.xlu1 %609  ;;  %vm2008_vm6 = vnez %v1936_v1  ;;  %v768_v1 = vld [vmem:[%s1802_s6] sm:$0xff] }
 0x353   :  { %v600_v51 = vsel %vm1996_vm13, %v1080_v36, %v1079_v15  ;;  %vm923_vm11 = vmpackc.low %vm1998_vm10, %vm1997_vm15  ;;  %v901_v32 = vpack.c.bf16 %v599_v50, %v583_v47  ;;  %v614_v6 = vsel %vm2001_vm1, %v608_v4, %v610_v58 }
 0x354   :  { %v922_v20 = vpack.c.bf16 %v600_v51, %v584_v18  ;;  %vm926_vm0 = vmpackc.low %vm2000_vm3, %vm1999_vm12 }
 0x355   :  { %903 = vmatpush1.bf16.msk.msra.mxu0 %vm902_vm9, %v901_v32  ;;  %vm2003_vm2 = vmmov %vm2001_vm1  ;;  %vm2006_vm9 = vnez %v1940_v53 }
 0x356   :  { %924 = vmatprep.subr.msk.bf16.mxu1 %vm923_vm11, %v922_v20  ;;  %844 = vmatprep.subr.msk.mxu0 %vm2002_vm5, %v614_v6  ;;  %v612_v23 = vpop.permute.xlu1 %611  ;;  %v615_v31 = vsel %vm2003_vm2, %v606_v8, %v608_v4  ;;  %vm2004_vm4 = vmmov %vm2001_vm1 }
 0x357   :  { %927 = vmatpush1.bf16.msk.msra.mxu1 %vm926_vm0, %v925_v55  ;;  %v613_v34 = vsel %vm2004_vm4, %v610_v58, %v612_v23  ;;  %vm2005_vm8 = vmmov %vm2001_vm1 }
 0x358   :  { %v616_v9 = vsel %vm2005_vm8, %v612_v23, %v606_v8 }
 0x359   :  { %845 = vmatpush1.msk.msra.mxu0 %vm2006_vm9, %v615_v31  ;;  %861 = vmatprep.subr.msk.mxu1 %vm2007_vm14, %v616_v9 }
 0x35a   :  { %846 = vmatmul.mubr.msk.f32.vlgmr.msra.gmra.mrb[2].mxu0 %vm621_vm7, %v492_v17 }
 0x35b   :  { %862 = vmatpush1.msk.msra.mxu1 %vm2008_vm6, %v613_v34 }
 0x35c   :  { %863 = vmatmul.mubr.msk.f32.vlgmr.msra.gmra.mrb[2].mxu1 %vm621_vm7, %v492_v17 }
 0x42d   :  { %v691_v25 = vpop.f32.mrb[2].mxu0 }
 0x42e   :  { %v774_v60 = vmul.f32 %v691_v25, %v691_v25  ;;  %v693_v13 = vpop.f32.mrb[3].mxu0 }
 0x42f   :  { %v762_v14 = vpop.f32.mrb[2].mxu1  ;;  %v769_v16 = vadd.f32 %v693_v13, %v691_v25  ;;  %v775_v19 = vmul.f32 %v693_v13, %v693_v13 }
 0x430   :  { %v776_v21 = vmul.f32 %v762_v14, %v762_v14  ;;  %v764_v10 = vpop.f32.mrb[3].mxu1 }
 0x431   :  { %v778_v22 = vadd.f32 %v775_v19, %v774_v60  ;;  %v770_v28 = vadd.f32 %v769_v16, %v762_v14  ;;  %v777_v53 = vmul.f32 %v764_v10, %v764_v10 }
 0x433   :  { %v771_v61 = vadd.f32 %v770_v28, %v764_v10  ;;  %v779_v26 = vadd.f32 %v778_v22, %v776_v21 }
 0x435   :  { %772 = vadd.xlane.f32.xlu0 %v771_v61  ;;  %v780_v63 = vadd.f32 %v779_v26, %v777_v53 }
 0x437   :  { %781 = vadd.xlane.f32.xlu1 %v780_v63 }
 0x448   :  { %805 = vperm.xlu1 %1010, %v768_v1  }
 0x4c2   :  { %v773_v62 = vpop.xlane.xlu0 %772 }
 0x4c3   :  { %v783_v3 = vmul.f32 0.001953125, %v773_v62 }
 0x4c4   :  { %v782_v48 = vpop.xlane.xlu1 %781 }
 0x4c5   :  { %v784_v49 = vmul.f32 0.001953125, %v782_v48  ;;  %v785_v2 = vmul.f32 %v783_v3, %v783_v3  ;;  %v790_v54 = vsub.f32 %v691_v25, %v783_v3  ;;  %v791_v0 = vsub.f32 %v693_v13, %v783_v3 }
 0x4c6   :  { %v792_v33 = vsub.f32 %v762_v14, %v783_v3  ;;  %v793_v12 = vsub.f32 %v764_v10, %v783_v3 }
 0x4c7   :  { %v786_v5 = vsub.f32 %v784_v49, %v785_v2 }
 0x4c8   :  { %v806_v59 = vpop.permute.xlu1 %805 }
 0x4c9   :  { %v787_v27 = vadd.f32 1e-05, %v786_v5 }
 0x4cb   :  { %1085 = vrsqrt.f32 %v787_v27 }
 0x4d5   :  { %v1086_v42 = vpop.eup %1085 }
 0x4d6   :  { %v789_v7 = vmul.f32 %v1086_v42, %v767_v35 }
 0x4d8   :  { %796 = vperm.xlu0 %1009, %v789_v7  }
 0x557   :  { %v797_v45 = vpop.permute.xlu0 %796 }
 0x558   :  { %v799_v24 = vmul.f32 %v797_v45, %v790_v54  ;;  %v800_v56 = vmul.f32 %v797_v45, %v791_v0  ;;  %v801_v43 = vmul.f32 %v797_v45, %v792_v33  ;;  %v802_v40 = vmul.f32 %v797_v45, %v793_v12 }
 0x55a   :  { %v808_v52 = vadd.f32 %v806_v59, %v799_v24  ;;  %v809_v37 = vadd.f32 %v806_v59, %v800_v56  ;;  %v810_v30 = vadd.f32 %v806_v59, %v801_v43  ;;  %v811_v29 = vadd.f32 %v806_v59, %v802_v40 }
 0x55c   :  { %v812_v38 = vmax.f32 %v808_v52, 0.0  ;;  %v813_v44 = vmax.f32 %v809_v37, 0.0  ;;  %v814_v39 = vmax.f32 %v810_v30, 0.0  ;;  %v815_v4 = vmax.f32 %v811_v29, 0.0 }
 0x55e   :  { %816 = vst [vmem:[%s1804_s7] sm:$0xff] %v812_v38  ;;  %817 = vst [vmem:[%s1804_s7 + $0x8] sm:$0xff] %v813_v44 }
 0x55f   :  { %818 = vst [vmem:[%s1804_s7 + $0x10] sm:$0xff] %v814_v39  ;;  %819 = vst [vmem:[%s1804_s7 + $0x18] sm:$0xff] %v815_v4 }

</bundles_post_ra>
